<compile_context>
chip_gen: v7x
topology: tpu7x:2x2x1
jax: 0.10.0
libtpu: 0.0.40
codegen_flags: <defaults>
</compile_context>

<pallas_src>
import functools

import jax
import jax.numpy as jnp
from jax import lax
from jax.experimental import pallas as pl
from jax.experimental.pallas import tpu as pltpu

EPS = 1e-5
_TARGET_BLOCK_BYTES = 2 * 1024 * 1024   # ~2 MiB streamed per grid step (near HBM roofline)
_ACC_LANES = 512                        # lane width of the partial-sum scratch


def _round_up(v, m):
    return -(-v // m) * m


def _vmem_capacity_bytes():
    try:
        return int(pltpu.get_tpu_info().vmem_capacity_bytes)
    except Exception:
        return 64 * 1024 * 1024         # conservative default (v7x per-TC VMEM)


_VMEM_CAP = _vmem_capacity_bytes()
_VMEM_LIMIT = max(32 * 1024 * 1024, min(int(0.75 * _VMEM_CAP), 112 * 1024 * 1024))


def _pack_factor(c, hw):
    """Fold HW into sublanes when C < 8 so (8,128) vregs are fully used."""
    if c >= 8:
        return 1
    s = 8 // c
    while s > 1 and hw % s != 0:
        s -= 1
    return s


# ----------------------------------------------------------------------------
# Tiled path, pass 1: per-batch-block partial sums of (x - pilot), (x - pilot)^2
# ----------------------------------------------------------------------------
def _stats_kernel(params_ref, x_ref, ps_ref, pq_ref, acc_s, acc_q,
                  *, m, mt, acc_w, need_mask):
    j = pl.program_id(1)

    @pl.when(j == 0)
    def _():
        acc_s[...] = jnp.zeros_like(acc_s)
        acc_q[...] = jnp.zeros_like(acc_q)

    pilot = params_ref[:, 4:5]                              # (cp, 1)

    # Per-lane partial accumulation (VPU adds only); single XLU reduce at end.
    off = 0
    while off < mt:                                         # static unroll
        wdt = min(acc_w, mt - off)
        xs = x_ref[:, :, off:off + wdt] - pilot             # (nb, cp, wdt)
        if need_mask:                                       # tail tile: mask padded lanes
            lane = lax.broadcasted_iota(jnp.int32, xs.shape, 2)
            xs = jnp.where(j * mt + off + lane < m, xs, 0.0)
        acc_s[:, 0:wdt] += jnp.sum(xs, axis=0)
        acc_q[:, 0:wdt] += jnp.sum(xs * xs, axis=0)
        off += wdt

    @pl.when(j == pl.num_programs(1) - 1)
    def _():
        ps_ref[0] = jnp.sum(acc_s[...], axis=1, keepdims=True)   # (cp, 1)
        pq_ref[0] = jnp.sum(acc_q[...], axis=1, keepdims=True)


# ----------------------------------------------------------------------------
# Tiled path, pass 2: o = scale_c * x + shift_c  (single FMA per element)
# ----------------------------------------------------------------------------
def _apply_kernel(scale_ref, shift_ref, x_ref, o_ref):
    o_ref[...] = scale_ref[...] * x_ref[...] + shift_ref[...]


# ----------------------------------------------------------------------------
# Fused single-pass path: whole x resident in VMEM (1 HBM read + 1 HBM write)
# ----------------------------------------------------------------------------
def _fused_kernel(params_ref, g_ref, x_hbm, o_hbm, xbuf, acc_s, acc_q, sem,
                  *, n, m, chunk, inv_cnt, use_group):
    # 1) Whole tensor HBM -> VMEM.
    copy_in = pltpu.make_async_copy(x_hbm, xbuf, sem.at[0])
    copy_in.start()
    copy_in.wait()

    p = params_ref[...]                                     # (cp, 8)
    pilot = p[:, 4:5]

    acc_s[...] = jnp.zeros_like(acc_s)
    acc_q[...] = jnp.zeros_like(acc_q)

    n_full, tail = divmod(m, chunk)                         # static

    # 2) Stats: chunked per-lane accumulation (keeps live values small).
    def _accum(i, start, width):
        xs = xbuf[i, :, pl.ds(start, width)] - pilot        # (cp, width)
        acc_s[:, 0:width] += xs
        acc_q[:, 0:width] += xs * xs

    @pl.loop(0, n)
    def _(i):
        @pl.loop(0, n_full)
        def _(k):
            _accum(i, k * chunk, chunk)
        if tail:
            _accum(i, n_full * chunk, tail)

    a_s = acc_s[...]
    a_q = acc_q[...]
    if use_group:
        # Sum the s sublane rows of each channel group (tiny MXU matmul).
        g = g_ref[...]
        a_s = jnp.dot(g, a_s, preferred_element_type=jnp.float32)
        a_q = jnp.dot(g, a_q, preferred_element_type=jnp.float32)
    s1 = jnp.sum(a_s, axis=1, keepdims=True)                # (cp, 1)
    s2 = jnp.sum(a_q, axis=1, keepdims=True)

    d = s1 * inv_cnt
    mean = pilot + d
    var = jnp.maximum(s2 * inv_cnt - d * d, 0.0)
    inv_std = lax.rsqrt(var + EPS)
    gain = p[:, 0:1] * inv_std                              # gamma * inv_std
    scale = p[:, 2:3] + p[:, 3:4] * gain                    # w + b*gamma*inv_std
    shift = p[:, 3:4] * (p[:, 1:2] - gain * mean)           # b*(beta - gain*mean)

    # 3) Apply in place in VMEM.
    def _apply(i, start, width):
        sl = pl.ds(start, width)
        xbuf[i, :, sl] = scale * xbuf[i, :, sl] + shift

    @pl.loop(0, n)
    def _(i):
        @pl.loop(0, n_full)
        def _(k):
            _apply(i, k * chunk, chunk)
        if tail:
            _apply(i, n_full * chunk, tail)

    # 4) Whole tensor VMEM -> HBM (output aliases the input buffer).
    copy_out = pltpu.make_async_copy(xbuf, o_hbm, sem.at[1])
    copy_out.start()
    copy_out.wait()


# ----------------------------------------------------------------------------
# Public wrapper
# ----------------------------------------------------------------------------
@functools.partial(jax.jit, static_argnames=("force_tiled",))
def adaptive_batch_norm_2d(x, gamma, beta, weight, bias, force_tiled=False):
    """weight * x + bias * BatchNorm2d(x), training-mode batch statistics."""
    n, c, h, w = x.shape
    hw = h * w
    s = _pack_factor(c, hw)
    cp, m = c * s, hw // s
    cp_pad = _round_up(cp, 8)
    m_pad = _round_up(m, 128)

    x3 = x.reshape(n, cp, m).astype(jnp.float32)            # free reshape (NCHW)

    # Per-channel pilot mean from a small slice of x (cancellation guard).
    k0 = min(hw, 1024)
    pilot_c = jnp.mean(x.reshape(n, c, hw)[0, :, :k0].astype(jnp.float32), axis=-1)

    def _expand(v):
        return jnp.repeat(v, s) if s > 1 else v

    gamma_r = _expand(gamma.astype(jnp.float32).reshape(c))
    beta_r = _expand(beta.astype(jnp.float32).reshape(c))
    pilot_r = _expand(pilot_c)
    w_s = jnp.asarray(weight, jnp.float32).reshape(())
    b_s = jnp.asarray(bias, jnp.float32).reshape(())
    zeros = jnp.zeros((cp,), jnp.float32)
    params = jnp.stack(
        [gamma_r, beta_r,
         jnp.broadcast_to(w_s, (cp,)), jnp.broadcast_to(b_s, (cp,)),
         pilot_r, zeros, zeros, zeros], axis=1)             # (cp, 8)

    inv_cnt = 1.0 / float(n * hw)

    # ---------------- fused single-pass path ----------------
    xbuf_bytes = n * cp_pad * m_pad * 4
    fused_ok = (not force_tiled) and (xbuf_bytes + 8 * 1024 * 1024 <= _VMEM_LIMIT)

    if fused_ok:
        use_group = s > 1
        gdim = cp if use_group else 8
        if use_group:
            gmat = jnp.repeat(jnp.repeat(jnp.eye(c, dtype=jnp.float32), s, 0), s, 1)
        else:
            gmat = jnp.eye(gdim, dtype=jnp.float32)         # dummy (unused)
        chunk_cap = max(128, (1 << 20) // (cp_pad * 4))
        chunk = m if m <= chunk_cap else (chunk_cap // 128) * 128

        out3 = pl.pallas_call(
            functools.partial(_fused_kernel, n=n, m=m, chunk=chunk,
                              inv_cnt=inv_cnt, use_group=use_group),
            out_shape=jax.ShapeDtypeStruct((n, cp, m), jnp.float32),
            grid_spec=pltpu.PrefetchScalarGridSpec(
                num_scalar_prefetch=0,
                grid=(1,),
                in_specs=[pl.BlockSpec((cp, 8), lambda i: (0, 0)),
                          pl.BlockSpec((gdim, gdim), lambda i: (0, 0)),
                          pl.BlockSpec(memory_space=pl.ANY)],
                out_specs=pl.BlockSpec(memory_space=pl.ANY),
                scratch_shapes=[pltpu.VMEM((n, cp, m), jnp.float32),
                                pltpu.VMEM((cp, chunk), jnp.float32),
                                pltpu.VMEM((cp, chunk), jnp.float32),
                                pltpu.SemaphoreType.DMA((2,))],
            ),
            compiler_params=pltpu.CompilerParams(
                dimension_semantics=("arbitrary",),
                vmem_limit_bytes=_VMEM_LIMIT),
            input_output_aliases={2: 0},
        )(params, gmat, x3)
        return out3.reshape(n, c, h, w).astype(x.dtype)

    # ---------------- tiled two-pass path ----------------
    mt_cap = max(128, _TARGET_BLOCK_BYTES // (cp_pad * 4))
    mt = m if m <= mt_cap else (mt_cap // 128) * 128
    gm = pl.cdiv(m, mt)
    mt_pad = _round_up(mt, 128)

    # Batch blocking (bytes/step), keeping >= 2 batch blocks for v7x megacore.
    max_nb = n if n == 1 else max(1, n // 2)
    nb = 1
    for d_ in range(max_nb, 0, -1):
        if n % d_ == 0 and d_ * cp_pad * mt_pad * 4 <= _TARGET_BLOCK_BYTES:
            nb = d_
            break
    gn = n // nb
    acc_w = min(_ACC_LANES, mt)
    need_mask = (m % mt) != 0

    # Pass 1: per-batch-block partial sums (batch axis "parallel").
    ps, pq = pl.pallas_call(
        functools.partial(_stats_kernel, m=m, mt=mt, acc_w=acc_w, need_mask=need_mask),
        out_shape=(jax.ShapeDtypeStruct((gn, cp, 1), jnp.float32),
                   jax.ShapeDtypeStruct((gn, cp, 1), jnp.float32)),
        grid_spec=pltpu.PrefetchScalarGridSpec(
            num_scalar_prefetch=0,
            grid=(gn, gm),
            in_specs=[pl.BlockSpec((cp, 8), lambda i, j: (0, 0)),
                      pl.BlockSpec((nb, cp, mt), lambda i, j: (i, 0, j))],
            out_specs=(pl.BlockSpec((1, cp, 1), lambda i, j: (i, 0, 0)),
                       pl.BlockSpec((1, cp, 1), lambda i, j: (i, 0, 0))),
            scratch_shapes=[pltpu.VMEM((cp, acc_w), jnp.float32),
                            pltpu.VMEM((cp, acc_w), jnp.float32)],
        ),
        compiler_params=pltpu.CompilerParams(
            dimension_semantics=("parallel", "arbitrary"),
            vmem_limit_bytes=_VMEM_LIMIT),
    )(params, x3)

    # Tiny mean/var/scale/shift fold in plain JAX (megacore-friendly epilogue).
    s1 = jnp.sum(ps, axis=0)[:, 0]                           # (cp,)
    s2 = jnp.sum(pq, axis=0)[:, 0]
    if s > 1:
        s1 = jnp.repeat(jnp.sum(s1.reshape(c, s), axis=1), s)
        s2 = jnp.repeat(jnp.sum(s2.reshape(c, s), axis=1), s)
    d = s1 * inv_cnt
    mean = pilot_r + d
    var = jnp.maximum(s2 * inv_cnt - d * d, 0.0)
    inv_std = lax.rsqrt(var + EPS)
    gain = gamma_r * inv_std
    scale = (w_s + b_s * gain).reshape(cp, 1)
    shift = (b_s * (beta_r - gain * mean)).reshape(cp, 1)

    # Pass 2: lane-dense per-element FMA, fully parallel, output aliases x.
    out3 = pl.pallas_call(
        _apply_kernel,
        out_shape=jax.ShapeDtypeStruct((n, cp, m), jnp.float32),
        grid_spec=pltpu.PrefetchScalarGridSpec(
            num_scalar_prefetch=0,
            grid=(gn, gm),
            in_specs=[pl.BlockSpec((cp, 1), lambda i, j: (0, 0)),
                      pl.BlockSpec((cp, 1), lambda i, j: (0, 0)),
                      pl.BlockSpec((nb, cp, mt), lambda i, j: (i, 0, j))],
            out_specs=pl.BlockSpec((nb, cp, mt), lambda i, j: (i, 0, j)),
        ),
        compiler_params=pltpu.CompilerParams(
            dimension_semantics=("parallel", "parallel"),
            vmem_limit_bytes=_VMEM_LIMIT),
        input_output_aliases={2: 0},
    )(scale, shift, x3)

    return out3.reshape(n, c, h, w).astype(x.dtype)


def _reference(x, gamma, beta, weight, bias):
    mean = jnp.mean(x, axis=(0, 2, 3), keepdims=True)
    var = jnp.mean((x - mean) ** 2, axis=(0, 2, 3), keepdims=True)
    bn = gamma.reshape(1, -1, 1, 1) * (x - mean) / jnp.sqrt(var + EPS) \
        + beta.reshape(1, -1, 1, 1)
    return weight * x + bias * bn


if __name__ == "__main__":
    key = jax.random.PRNGKey(0)
    kx, kg, kb = jax.random.split(key, 3)

    N, C, H, W = 2, 4, 16, 16
    # Offset exercises the pilot-shifted (cancellation-safe) statistics.
    x = jax.random.normal(kx, (N, C, H, W), dtype=jnp.float32) + 3.0

    # Deterministic synthetic parameters (no checkpoint load).
    gamma = 1.0 + 0.1 * jax.random.normal(kg, (C,), dtype=jnp.float32)  # BN weight
    beta = 0.1 * jax.random.normal(kb, (C,), dtype=jnp.float32)         # BN bias
    weight = jnp.float32(0.75)   # self.weight (1,1,1,1) scalar
    bias = jnp.float32(0.25)     # self.bias   (1,1,1,1) scalar

    ref = _reference(x, gamma, beta, weight, bias)

    # Fused (VMEM-resident) path — chosen automatically at this size.
    out_fused = jax.block_until_ready(
        adaptive_batch_norm_2d(x, gamma, beta, weight, bias))
    # Tiled two-pass path — forced, to validate the streaming kernels too.
    out_tiled = jax.block_until_ready(
        adaptive_batch_norm_2d(x, gamma, beta, weight, bias, force_tiled=True))

    assert out_fused.shape == (N, C, H, W)
    err_f = float(jnp.max(jnp.abs(out_fused - ref)))
    err_t = float(jnp.max(jnp.abs(out_tiled - ref)))
    assert err_f < 1e-4, f"fused path mismatch vs reference: {err_f}"
    assert err_t < 1e-4, f"tiled path mismatch vs reference: {err_t}"

    print("KERNEL_OK")
</pallas_src>

<mosaic_0001>
module attributes {stable_mosaic.version = 11 : i64} {
  func.func @_fused_kernel(%arg0: i32, %arg1: memref<8x8xf32, #tpu.memory_space<vmem>>, %arg2: memref<8x8xf32, #tpu.memory_space<vmem>>, %arg3: memref<2x8x128xf32, #tpu.memory_space<any>>, %arg4: memref<2x8x128xf32, #tpu.memory_space<any>>, %arg5: memref<2x8x128xf32, #tpu.memory_space<vmem>>, %arg6: memref<8x128xf32, #tpu.memory_space<vmem>>, %arg7: memref<8x128xf32, #tpu.memory_space<vmem>>, %arg8: memref<2x!tpu.dma_semaphore, #tpu.memory_space<semaphore_mem>>) attributes {dimension_semantics = [#tpu.dimension_semantics<arbitrary>], iteration_bounds = array<i64: 1>, scalar_prefetch = 0 : i64, scratch_operands = 4 : i64, tpu.core_type = #tpu.core_type<tc>, window_params = [{pipeline_mode = #tpu.pipeline_mode<synchronous>, transform_indices = @transform_0, window_bounds = array<i64: 8, 8>}, {pipeline_mode = #tpu.pipeline_mode<synchronous>, transform_indices = @transform_1, window_bounds = array<i64: 8, 8>}, {}, {}]} {
    %c0_i32 = arith.constant 0 : i32
    %0 = tpu.memref_slice %arg8[%c0_i32] : memref<2x!tpu.dma_semaphore, #tpu.memory_space<semaphore_mem>> -> memref<1x!tpu.dma_semaphore, #tpu.memory_space<semaphore_mem>>
    %1 = tpu.memref_squeeze %0 : memref<1x!tpu.dma_semaphore, #tpu.memory_space<semaphore_mem>> -> memref<!tpu.dma_semaphore, #tpu.memory_space<semaphore_mem>>
    tpu.enqueue_dma source(%arg3 : memref<2x8x128xf32, #tpu.memory_space<any>>) target(%arg5 : memref<2x8x128xf32, #tpu.memory_space<vmem>>) target_semaphore(%1 : memref<!tpu.dma_semaphore, #tpu.memory_space<semaphore_mem>>)
    %c0_i32_0 = arith.constant 0 : i32
    %2 = tpu.memref_slice %arg8[%c0_i32_0] : memref<2x!tpu.dma_semaphore, #tpu.memory_space<semaphore_mem>> -> memref<1x!tpu.dma_semaphore, #tpu.memory_space<semaphore_mem>>
    %3 = tpu.memref_squeeze %2 : memref<1x!tpu.dma_semaphore, #tpu.memory_space<semaphore_mem>> -> memref<!tpu.dma_semaphore, #tpu.memory_space<semaphore_mem>>
    tpu.wait_dma2 semaphore(%3 : memref<!tpu.dma_semaphore, #tpu.memory_space<semaphore_mem>>) src(%arg3 : memref<2x8x128xf32, #tpu.memory_space<any>>) dst(%arg5 : memref<2x8x128xf32, #tpu.memory_space<vmem>>)
    %c0 = arith.constant 0 : index
    %c0_1 = arith.constant 0 : index
    %4 = vector.load %arg1[%c0, %c0_1] : memref<8x8xf32, #tpu.memory_space<vmem>>, vector<8x8xf32>
    %5 = vector.extract_strided_slice %4 {offsets = [0, 4], sizes = [8, 1], strides = [1, 1]} : vector<8x8xf32> to vector<8x1xf32>
    %cst = arith.constant 0.000000e+00 : f32
    %6 = vector.broadcast %cst : f32 to vector<8x128xf32>
    %c0_2 = arith.constant 0 : index
    %c0_3 = arith.constant 0 : index
    %7 = vector.load %arg6[%c0_2, %c0_3] : memref<8x128xf32, #tpu.memory_space<vmem>>, vector<8x128xf32>
    tpu.vector_store %arg6[%c0_2, %c0_3], %6 {strides = array<i32>} : memref<8x128xf32, #tpu.memory_space<vmem>>, vector<8x128xf32>,
    %cst_4 = arith.constant 0.000000e+00 : f32
    %8 = vector.broadcast %cst_4 : f32 to vector<8x128xf32>
    %c0_5 = arith.constant 0 : index
    %c0_6 = arith.constant 0 : index
    %9 = vector.load %arg7[%c0_5, %c0_6] : memref<8x128xf32, #tpu.memory_space<vmem>>, vector<8x128xf32>
    tpu.vector_store %arg7[%c0_5, %c0_6], %8 {strides = array<i32>} : memref<8x128xf32, #tpu.memory_space<vmem>>, vector<8x128xf32>,
    %c0_i32_7 = arith.constant 0 : i32
    %c2_i32 = arith.constant 2 : i32
    %10 = arith.addi %c0_i32_7, %c2_i32 : i32
    %c1_i32 = arith.constant 1 : i32
    scf.for %arg9 = %c0_i32_7 to %10 step %c1_i32  : i32 {
      %c1_i32_29 = arith.constant 1 : i32
      %48 = arith.muli %arg9, %c1_i32_29 : i32
      %c0_i32_30 = arith.constant 0 : i32
      %49 = arith.addi %c0_i32_30, %48 : i32
      %c0_i32_31 = arith.constant 0 : i32
      %c1_i32_32 = arith.constant 1 : i32
      %50 = arith.muli %c0_i32_31, %c1_i32_32 : i32
      %c0_i32_33 = arith.constant 0 : i32
      %51 = arith.addi %c0_i32_33, %50 : i32
      %c128_i32 = arith.constant 128 : i32
      %52 = arith.muli %51, %c128_i32 : i32
      %53 = arith.index_cast %49 : i32 to index
      %c0_34 = arith.constant 0 : index
      %54 = arith.index_cast %52 : i32 to index
      %55 = vector.load %arg5[%53, %c0_34, %54] : memref<2x8x128xf32, #tpu.memory_space<vmem>>, vector<1x8x128xf32>
      %56 = vector.shape_cast %55 : vector<1x8x128xf32> to vector<8x128xf32>
      %57 = vector.broadcast %5 : vector<8x1xf32> to vector<8x128xf32>
      %58 = arith.subf %56, %57 : vector<8x128xf32>
      %c0_35 = arith.constant 0 : index
      %c0_36 = arith.constant 0 : index
      %59 = vector.load %arg6[%c0_35, %c0_36] : memref<8x128xf32, #tpu.memory_space<vmem>>, vector<8x128xf32>
      %60 = arith.addf %59, %58 : vector<8x128xf32>
      %c0_37 = arith.constant 0 : index
      %c0_38 = arith.constant 0 : index
      %61 = vector.load %arg6[%c0_37, %c0_38] : memref<8x128xf32, #tpu.memory_space<vmem>>, vector<8x128xf32>
      tpu.vector_store %arg6[%c0_37, %c0_38], %60 {strides = array<i32>} : memref<8x128xf32, #tpu.memory_space<vmem>>, vector<8x128xf32>,
      %c0_39 = arith.constant 0 : index
      %c0_40 = arith.constant 0 : index
      %62 = vector.load %arg7[%c0_39, %c0_40] : memref<8x128xf32, #tpu.memory_space<vmem>>, vector<8x128xf32>
      %63 = arith.mulf %58, %58 : vector<8x128xf32>
      %64 = arith.addf %62, %63 : vector<8x128xf32>
      %c0_41 = arith.constant 0 : index
      %c0_42 = arith.constant 0 : index
      %65 = vector.load %arg7[%c0_41, %c0_42] : memref<8x128xf32, #tpu.memory_space<vmem>>, vector<8x128xf32>
      tpu.vector_store %arg7[%c0_41, %c0_42], %64 {strides = array<i32>} : memref<8x128xf32, #tpu.memory_space<vmem>>, vector<8x128xf32>,
      %c1_i32_43 = arith.constant 1 : i32
    }
    %c2_i32_8 = arith.constant 2 : i32
    %c0_9 = arith.constant 0 : index
    %c0_10 = arith.constant 0 : index
    %11 = vector.load %arg6[%c0_9, %c0_10] : memref<8x128xf32, #tpu.memory_space<vmem>>, vector<8x128xf32>
    %c0_11 = arith.constant 0 : index
    %c0_12 = arith.constant 0 : index
    %12 = vector.load %arg7[%c0_11, %c0_12] : memref<8x128xf32, #tpu.memory_space<vmem>>, vector<8x128xf32>
    %c0_13 = arith.constant 0 : index
    %c0_14 = arith.constant 0 : index
    %13 = vector.load %arg2[%c0_13, %c0_14] : memref<8x8xf32, #tpu.memory_space<vmem>>, vector<8x8xf32>
    %cst_15 = arith.constant dense<0.000000e+00> : vector<8x128xf32>
    %14 = tpu.matmul %13, %11, %cst_15 {dimension_numbers = #tpu.dot_dimension_numbers<[1], [0], [0], [1], [0, 0, 1, 1], [], []>} : vector<8x8xf32>, vector<8x128xf32>, vector<8x128xf32> -> vector<8x128xf32>
    %cst_16 = arith.constant dense<0.000000e+00> : vector<8x128xf32>
    %15 = tpu.matmul %13, %12, %cst_16 {dimension_numbers = #tpu.dot_dimension_numbers<[1], [0], [0], [1], [0, 0, 1, 1], [], []>} : vector<8x8xf32>, vector<8x128xf32>, vector<8x128xf32> -> vector<8x128xf32>
    %cst_17 = arith.constant dense<0.000000e+00> : vector<8xf32>
    %16 = vector.multi_reduction <add>, %14, %cst_17 [1] : vector<8x128xf32> to vector<8xf32>
    %17 = vector.shape_cast %16 : vector<8xf32> to vector<8x1xf32>
    %cst_18 = arith.constant dense<0.000000e+00> : vector<8xf32>
    %18 = vector.multi_reduction <add>, %15, %cst_18 [1] : vector<8x128xf32> to vector<8xf32>
    %19 = vector.shape_cast %18 : vector<8xf32> to vector<8x1xf32>
    %cst_19 = arith.constant 0.001953125 : f32
    %20 = vector.broadcast %cst_19 : f32 to vector<8x1xf32>
    %21 = arith.mulf %17, %20 : vector<8x1xf32>
    %22 = arith.addf %5, %21 : vector<8x1xf32>
    %cst_20 = arith.constant 0.001953125 : f32
    %23 = vector.broadcast %cst_20 : f32 to vector<8x1xf32>
    %24 = arith.mulf %19, %23 : vector<8x1xf32>
    %25 = arith.mulf %21, %21 : vector<8x1xf32>
    %26 = arith.subf %24, %25 : vector<8x1xf32>
    %cst_21 = arith.constant 0.000000e+00 : f32
    %27 = vector.broadcast %cst_21 : f32 to vector<8x1xf32>
    %28 = arith.maximumf %26, %27 : vector<8x1xf32>
    %cst_22 = arith.constant 9.99999974E-6 : f32
    %29 = vector.broadcast %cst_22 : f32 to vector<8x1xf32>
    %30 = arith.addf %28, %29 : vector<8x1xf32>
    %31 = math.rsqrt %30 : vector<8x1xf32>
    %32 = vector.extract_strided_slice %4 {offsets = [0, 0], sizes = [8, 1], strides = [1, 1]} : vector<8x8xf32> to vector<8x1xf32>
    %33 = arith.mulf %32, %31 : vector<8x1xf32>
    %34 = vector.extract_strided_slice %4 {offsets = [0, 2], sizes = [8, 1], strides = [1, 1]} : vector<8x8xf32> to vector<8x1xf32>
    %35 = vector.extract_strided_slice %4 {offsets = [0, 3], sizes = [8, 1], strides = [1, 1]} : vector<8x8xf32> to vector<8x1xf32>
    %36 = arith.mulf %35, %33 : vector<8x1xf32>
    %37 = arith.addf %34, %36 : vector<8x1xf32>
    %38 = vector.extract_strided_slice %4 {offsets = [0, 3], sizes = [8, 1], strides = [1, 1]} : vector<8x8xf32> to vector<8x1xf32>
    %39 = vector.extract_strided_slice %4 {offsets = [0, 1], sizes = [8, 1], strides = [1, 1]} : vector<8x8xf32> to vector<8x1xf32>
    %40 = arith.mulf %33, %22 : vector<8x1xf32>
    %41 = arith.subf %39, %40 : vector<8x1xf32>
    %42 = arith.mulf %38, %41 : vector<8x1xf32>
    %c0_i32_23 = arith.constant 0 : i32
    %c2_i32_24 = arith.constant 2 : i32
    %43 = arith.addi %c0_i32_23, %c2_i32_24 : i32
    %c1_i32_25 = arith.constant 1 : i32
    scf.for %arg9 = %c0_i32_23 to %43 step %c1_i32_25  : i32 {
      %c1_i32_29 = arith.constant 1 : i32
      %48 = arith.muli %arg9, %c1_i32_29 : i32
      %c0_i32_30 = arith.constant 0 : i32
      %49 = arith.addi %c0_i32_30, %48 : i32
      %c0_i32_31 = arith.constant 0 : i32
      %c1_i32_32 = arith.constant 1 : i32
      %50 = arith.muli %c0_i32_31, %c1_i32_32 : i32
      %c0_i32_33 = arith.constant 0 : i32
      %51 = arith.addi %c0_i32_33, %50 : i32
      %c128_i32 = arith.constant 128 : i32
      %52 = arith.muli %51, %c128_i32 : i32
      %53 = arith.index_cast %49 : i32 to index
      %c0_34 = arith.constant 0 : index
      %54 = arith.index_cast %52 : i32 to index
      %55 = vector.load %arg5[%53, %c0_34, %54] : memref<2x8x128xf32, #tpu.memory_space<vmem>>, vector<1x8x128xf32>
      %56 = vector.shape_cast %55 : vector<1x8x128xf32> to vector<8x128xf32>
      %57 = vector.broadcast %37 : vector<8x1xf32> to vector<8x128xf32>
      %58 = arith.mulf %57, %56 : vector<8x128xf32>
      %59 = vector.broadcast %42 : vector<8x1xf32> to vector<8x128xf32>
      %60 = arith.addf %58, %59 : vector<8x128xf32>
      %61 = arith.index_cast %49 : i32 to index
      %c0_35 = arith.constant 0 : index
      %62 = arith.index_cast %52 : i32 to index
      %63 = vector.load %arg5[%61, %c0_35, %62] : memref<2x8x128xf32, #tpu.memory_space<vmem>>, vector<1x8x128xf32>
      %64 = vector.shape_cast %63 : vector<1x8x128xf32> to vector<8x128xf32>
      %65 = vector.shape_cast %60 : vector<8x128xf32> to vector<1x8x128xf32>
      tpu.vector_store %arg5[%61, %c0_35, %62], %65 {strides = array<i32>} : memref<2x8x128xf32, #tpu.memory_space<vmem>>, vector<1x8x128xf32>,
      %c1_i32_36 = arith.constant 1 : i32
    }
    %c2_i32_26 = arith.constant 2 : i32
    %c1_i32_27 = arith.constant 1 : i32
    %44 = tpu.memref_slice %arg8[%c1_i32_27] : memref<2x!tpu.dma_semaphore, #tpu.memory_space<semaphore_mem>> -> memref<1x!tpu.dma_semaphore, #tpu.memory_space<semaphore_mem>>
    %45 = tpu.memref_squeeze %44 : memref<1x!tpu.dma_semaphore, #tpu.memory_space<semaphore_mem>> -> memref<!tpu.dma_semaphore, #tpu.memory_space<semaphore_mem>>
    tpu.enqueue_dma source(%arg5 : memref<2x8x128xf32, #tpu.memory_space<vmem>>) target(%arg4 : memref<2x8x128xf32, #tpu.memory_space<any>>) target_semaphore(%45 : memref<!tpu.dma_semaphore, #tpu.memory_space<semaphore_mem>>)
    %c1_i32_28 = arith.constant 1 : i32
    %46 = tpu.memref_slice %arg8[%c1_i32_28] : memref<2x!tpu.dma_semaphore, #tpu.memory_space<semaphore_mem>> -> memref<1x!tpu.dma_semaphore, #tpu.memory_space<semaphore_mem>>
    %47 = tpu.memref_squeeze %46 : memref<1x!tpu.dma_semaphore, #tpu.memory_space<semaphore_mem>> -> memref<!tpu.dma_semaphore, #tpu.memory_space<semaphore_mem>>
    tpu.wait_dma2 semaphore(%47 : memref<!tpu.dma_semaphore, #tpu.memory_space<semaphore_mem>>) src(%arg5 : memref<2x8x128xf32, #tpu.memory_space<vmem>>) dst(%arg4 : memref<2x8x128xf32, #tpu.memory_space<any>>)
    return
  }
  func.func @transform_0(%arg0: i32) -> (i32, i32) {
    %c0_i32 = arith.constant 0 : i32
    %c0_i32_0 = arith.constant 0 : i32
    %c0_i32_1 = arith.constant 0 : i32
    return %c0_i32, %c0_i32_0 : i32, i32
  }
  func.func @transform_1(%arg0: i32) -> (i32, i32) {
    %c0_i32 = arith.constant 0 : i32
    %c0_i32_0 = arith.constant 0 : i32
    %c0_i32_1 = arith.constant 0 : i32
    return %c0_i32, %c0_i32_0 : i32, i32
  }
}

</mosaic_0001>

<bundles_post_ra>
// kernel: adaptive_batch_norm_2d.1
= control target key start
LH: loop header
LB: loop body
LE: loop exit
PB: predicated region body
PF: predicated region fallthrough
CT: control target
= control target key end

     0   :  { %s510_s0 = inlined_call_operand.vmem [shape: f32[8,8], index: 0, kind: input, shape index: {}]   ;;  %s511_s1 = inlined_call_operand.vmem [shape: f32[8,8], index: 1, kind: input, shape index: {}]   ;;  %s512_s2 = inlined_call_operand.vmem [shape: f32[2,8,128], index: 2, kind: input, shape index: {}, may-alias: {2,3}]   ;;  %s513_s3 = inlined_call_operand.vmem [shape: f32[2,8,128], index: 3, kind: output, shape index: {}, may-alias: {2,3}]  }
   0x1   :  { %v44_v0 = vld [vmem:[%s512_s2] sm:$0xff]  ;;  %v46_v1 = vld [vmem:[%s512_s2 + $0x8] sm:$0xff] }
   0x2   :  { %45 = vst [vmem:[#allocation2] sm:$0xff] %v44_v0  ;;  %47 = vst [vmem:[#allocation2 + $0x8] sm:$0xff] %v46_v1 }
   0x3   :  { %55 = vsyncadd [#allocation5], 256 }
   0x4   :  { %441 = dma.done.wait [#allocation5], 256 }
   0x5   :  { %442 = vsyncadd [#allocation5], 4294967040  ;;  %v453_v2 = vmov 0.0   ;;  %v492_v3 = vld [vmem:[%s510_s0] sm:$0xff]  ;;  %s445_s18 = smov 0  }
   0x6   :  { %61 = vst [vmem:[#allocation3] sm:$0xff] %v453_v2  ;;  %62 = vst [vmem:[#allocation4] sm:$0xff] %v453_v2 }
   0x7 LB: > { %v454_v4 = vmov 4   ;;  %s382_s2 = sshll.u32 %s447_s18, 3  ;;  %s68_s18 = sadd.s32 1, %s447_s18   ;;  %s447_s18 = sphi %s445_s18, %s68_s18  }
   0x8   : > { %428 = vset.pattern.permute.xlu0 %v454_v4  ;;  %s70_s19 = scalar_lea.vmem [#allocation2], %s382_s2  ;;  %p65_p0 = scmp.ge.s32.totalorder %s68_s18, 2  }
   0x9   : > { %74 = vperm.xlu0 %428, %v492_v3   ;;  %v71_v5 = vld [vmem:[%s70_s19] sm:$0xff]  ;;  %392 = vmatprep.subr.mxu0 (%p65_p0), %v453_v2  ;;  %vm88_vm0 = vcmask (%p65_p0), 64512   ;;  %vm455_vm1 = vmmov (%p65_p0), 0   ;;  %s457_s21 = smov (%p65_p0), 3   ;;  %s458_s22 = smov (%p65_p0), 1  }
   0xa   :  { %v87_v14 = vld [vmem:[%s511_s1] sm:$0xff] (%p65_p0)  ;;  %397 = vmatprep.subr.mxu1 (%p65_p0), %v453_v2  ;;  %394 = vmatprep.mubr.msk.f32.mxu0 (%p65_p0), %vm455_vm1, %v453_v2  ;;  %s456_s1 = smov (%p65_p0), 124   ;;  %s459_s23 = smov (%p65_p0), 127  }
   0xb   :  { %399 = vmatprep.mubr.msk.f32.mxu1 (%p65_p0), %vm455_vm1, %v453_v2  ;;  %s460_s24 = smov (%p65_p0), 2   ;;  %s449_s25 = smov (%p65_p0), 0  }
   0xd   : > { %v78_v6 = vld [vmem:[#allocation3] sm:$0xff]  ;;  %v81_v9 = vld [vmem:[#allocation4] sm:$0xff] }
  0x88   : > { %v75_v7 = vpop.permute.xlu0 %74 }
  0x89   : > { %v77_v8 = vsub.f32 %v71_v5, %v75_v7  ;;  %67 = sbr.rel (!%p65_p0) target bundleno = 7 (0x7), region = 122 }
  0x8b   : > { %v79_v10 = vadd.f32 %v78_v6, %v77_v8  ;;  %v82_v11 = vmul.f32 %v77_v8, %v77_v8 }
  0x8d   : > { %80 = vst [vmem:[#allocation3] sm:$0xff] %v79_v10  ;;  %v83_v12 = vadd.f32 %v82_v11, %v81_v9 }
  0x8f   : > { %84 = vst [vmem:[#allocation4] sm:$0xff] %v83_v12 }
  0x94   :  { %v85_v13 = vld [vmem:[#allocation3] sm:$0xff] }
  0x95   :  { %393 = vmatpush3.msra.mxu0 %v85_v13 }
  0x96   :  { %v86_v15 = vld [vmem:[#allocation4] sm:$0xff]  ;;  %395 = vmatmul.mubr.msk.f32.vlgmr.msra.gmra.mrb[0].mxu0 %vm88_vm0, %v87_v14 }
  0x97   :  { %398 = vmatpush3.msra.mxu1 %v86_v15 }
  0x98   :  { %400 = vmatmul.mubr.msk.f32.vlgmr.msra.gmra.mrb[0].mxu1 %vm88_vm0, %v87_v14 }
 0x169   :  { %v158_v16 = vpop.f32.mrb[0].mxu0 }
 0x16a   :  { %232 = vadd.xlane.f32.xlu0 %v158_v16  ;;  %v396_v17 = vpop.f32.mrb[1].mxu0 }
 0x16b   :  { %v228_v18 = vpop.f32.mrb[0].mxu1 }
 0x16c   :  { %v401_v19 = vpop.f32.mrb[1].mxu1 }
 0x16e   :  { %234 = vadd.xlane.f32.xlu0 %v228_v18 }
 0x1f7   :  { %v233_v20 = vpop.xlane.xlu0 %232 }
 0x1f8   :  { %v236_v21 = vmul.f32 0.001953125, %v233_v20 }
 0x1fa   :  { %v237_v22 = vadd.f32 %v236_v21, %v492_v3  ;;  %v239_v24 = vmul.f32 %v236_v21, %v236_v21 }
 0x1fb   :  { %v235_v23 = vpop.xlane.xlu0 %234 }
 0x1fc   :  { %v238_v25 = vmul.f32 0.001953125, %v235_v23  ;;  %256 = vrot.lane.b32.xlu1 %v237_v22, %s456_s1 }
 0x1fe   :  { %v240_v26 = vsub.f32 %v238_v25, %v239_v24 }
 0x200   :  { %v241_v27 = vmax.f32 %v240_v26, 0.0 }
 0x202   :  { %v242_v28 = vadd.f32 1e-05, %v241_v27 }
 0x204   :  { %429 = vrsqrt.f32 %v242_v28 }
 0x20e   :  { %v430_v29 = vpop.eup %429 }
 0x20f   :  { %v244_v30 = vmul.f32 %v430_v29, %v492_v3 }
 0x211   :  { %246 = vrot.lane.b32.xlu1 %v244_v30, %s457_s21 }
 0x26e   :  { %v257_v31 = vpop.permute.xlu1 %256 }
 0x26f   :  { %v259_v32 = vmul.f32 %v257_v31, %v244_v30 }
 0x271   :  { %261 = vrot.lane.b32.xlu0 %v259_v32, %s458_s22 }
 0x283   :  { %v247_v33 = vpop.permute.xlu1 %246 }
 0x284   :  { %v249_v34 = vmul.f32 %v247_v33, %v492_v3 }
 0x286   :  { %251 = vrot.lane.b32.xlu1 %v249_v34, %s459_s23 }
 0x2e3   :  { %v262_v35 = vpop.permute.xlu0 %261 }
 0x2e4   :  { %v264_v36 = vsub.f32 %v492_v3, %v262_v35 }
 0x2e6   :  { %266 = vrot.lane.b32.xlu1 %v264_v36, %s460_s24 }
 0x2f8   :  { %v252_v37 = vpop.permute.xlu1 %251 }
 0x2f9   :  { %v254_v38 = vadd.f32 %v252_v37, %v492_v3 }
 0x358   :  { %v267_v39 = vpop.permute.xlu1 %266 }
 0x359   :  { %v269_v40 = vmul.f32 %v267_v39, %v492_v3 }
 0x35a LB: > { %v461_v41 = vmov 2   ;;  %v462_v42 = vmov 3   ;;  %s385_s26 = sshll.u32 %s451_s25, 3  ;;  %s275_s25 = sadd.s32 1, %s451_s25   ;;  %s451_s25 = sphi %s449_s25, %s275_s25  }
 0x35b   : > { %431 = vset.pattern.permute.xlu0 %v461_v41  ;;  %s277_s27 = scalar_lea.vmem [#allocation2], %s385_s26  ;;  %p272_p1 = scmp.ge.s32.totalorder %s275_s25, 2  }
 0x35c   : > { %281 = vperm.xlu0 %431, %v254_v38   ;;  %v278_v44 = vld [vmem:[%s277_s27] sm:$0xff] }
 0x360   : > { %432 = vset.pattern.permute.xlu0 %v462_v42 }
 0x361   : > { %287 = vperm.xlu0 %432, %v269_v40  }
 0x3db   : > { %v282_v43 = vpop.permute.xlu0 %281 }
 0x3dc   : > { %v284_v45 = vmul.f32 %v282_v43, %v278_v44 }
 0x3dd   :  { %274 = sbr.rel (!%p272_p1) target bundleno = 858 (0x35a), region = 133 }
 0x3e0   : > { %v288_v46 = vpop.permute.xlu0 %287 }
 0x3e1   : > { %v290_v47 = vadd.f32 %v288_v46, %v284_v45 }
 0x3e3   : > { %291 = vst [vmem:[%s277_s27] sm:$0xff] %v290_v47 }
 0x3ea   :  { %v325_v48 = vld [vmem:[#allocation2] sm:$0xff]  ;;  %v327_v49 = vld [vmem:[#allocation2 + $0x8] sm:$0xff] }
 0x3eb   :  { %326 = vst [vmem:[%s513_s3] sm:$0xff] %v325_v48  ;;  %328 = vst [vmem:[%s513_s3 + $0x8] sm:$0xff] %v327_v49 }
 0x3ec   :  { %336 = vsyncadd [#allocation5 + $0x1], 256 }
 0x3ed   :  { %443 = dma.done.wait [#allocation5 + $0x1], 256 }
 0x3ee   :  { %444 = vsyncadd [#allocation5 + $0x1], 4294967040 }
 0x3ef   :  { %339 = vsyncmov [#allocation5] }
 0x3f2   :  { %s340_s5 = vpop.sfrf %339 }
 0x3f3   :  { %p386_p2 = scmp.ne.s32.totalorder %s340_s5, 0 }
 0x3f5   :  { %344 = shalt.err (%p386_p2)  }
 0x3f6   :  { %346 = vsyncmov [#allocation5 + $0x1] }
 0x3f9   :  { %s347_s6 = vpop.sfrf %346 }
 0x3fa   :  { %p387_p3 = scmp.ne.s32.totalorder %s347_s6, 0 }
 0x3fc   :  { %351 = shalt.err (%p387_p3)  }

</bundles_post_ra>
